<compile_context>
chip_gen: v5e
topology: v5e:2x2
jax: 0.10.0
libtpu: 0.0.40
codegen_flags: <defaults>
</compile_context>

<pallas_src>
import jax
import jax.numpy as jnp
from jax.experimental import pallas as pl
from jax.experimental.pallas import tpu as pltpu


def _round_up(x, mult):
    return ((x + mult - 1) // mult) * mult


def _quadratic_cost_kernel(inp_ref, m_ref, out_ref):
    # inp_ref: (TB, n+m), m_ref: (n+m, n+m) block-diagonal [Q, 0; 0, R],
    # out_ref: (TB, 1).  Single MXU matmul + VPU mul + XLU row-reduce.
    inp = inp_ref[...]
    y = jnp.dot(inp, m_ref[...], preferred_element_type=jnp.float32)  # (TB, nm)
    out_ref[...] = jnp.sum(y * inp.astype(jnp.float32), axis=1,
                           keepdims=True).astype(out_ref.dtype)


def quadratic_stage_cost(inp, Q, R, *, tb=1024):
    """Pallas implementation of x^T Q x + u^T R u, batched over rows of inp."""
    B, nm = inp.shape
    n = Q.shape[0]
    m = R.shape[0]
    assert nm == n + m, "input feature dim must equal n + m"

    # One-time fuse of Q, R into a block-diagonal matrix (wrapper-side, outside
    # the kernel). Cross blocks are zero, so x^T Q x + u^T R u == z^T M z.
    M = jnp.zeros((nm, nm), dtype=jnp.float32)
    M = M.at[:n, :n].set(Q.astype(jnp.float32))
    M = M.at[n:, n:].set(R.astype(jnp.float32))

    # Batch tile: multiple of 8 (sublane rule), capped at `tb` rows.
    TB = min(tb, _round_up(B, 8))
    B_pad = _round_up(B, TB)
    if B_pad != B:
        inp_p = jnp.zeros((B_pad, nm), dtype=inp.dtype).at[:B].set(inp)
    else:
        inp_p = inp

    out = pl.pallas_call(
        _quadratic_cost_kernel,
        out_shape=jax.ShapeDtypeStruct((B_pad, 1), jnp.float32),
        grid_spec=pl.GridSpec(
            grid=(B_pad // TB,),
            in_specs=[
                # Batch-tiled input: pipelined / double-buffered across the grid.
                pl.BlockSpec((TB, nm), lambda i: (i, 0)),
                # Block-diagonal cost matrix: same block every step (stays resident).
                pl.BlockSpec((nm, nm), lambda i: (0, 0)),
            ],
            out_specs=pl.BlockSpec((TB, 1), lambda i: (i, 0)),
        ),
        compiler_params=pltpu.CompilerParams(
            dimension_semantics=("parallel",),
        ),
    )(inp_p, M)

    return out[:B] if B_pad != B else out


def quadratic_stage_cost_ref(inp, Q, R):
    n = Q.shape[0]
    x, u = inp[..., :n], inp[..., n:]
    return ((x @ Q) * x).sum(axis=1, keepdims=True) + \
           ((u @ R) * u).sum(axis=1, keepdims=True)


if __name__ == "__main__":
    # Module sizes: state dim n, control dim m (mimic torch.rand init for Q, R).
    n, m = 16, 8

    key = jax.random.PRNGKey(0)
    k_q, k_r, k_in = jax.random.split(key, 3)

    Q = jax.random.uniform(k_q, (n, n), dtype=jnp.float32)     # ~ torch.rand((n, n))
    R = jax.random.uniform(k_r, (m, m), dtype=jnp.float32)     # ~ torch.rand((m, m))

    # Case 1: small batch, exact tile.
    batch = 8
    inp = jax.random.normal(k_in, (batch, n + m), dtype=jnp.float32)
    out = jax.block_until_ready(quadratic_stage_cost(inp, Q, R))
    ref = quadratic_stage_cost_ref(inp, Q, R)
    assert out.shape == (batch, 1), out.shape
    assert jnp.allclose(out, ref, rtol=1e-5, atol=1e-5), (out, ref)

    # Case 2: batch not a multiple of 8 (exercises the wrapper padding path).
    batch2 = 10
    inp2 = jax.random.normal(jax.random.PRNGKey(1), (batch2, n + m),
                             dtype=jnp.float32)
    out2 = jax.block_until_ready(quadratic_stage_cost(inp2, Q, R))
    ref2 = quadratic_stage_cost_ref(inp2, Q, R)
    assert out2.shape == (batch2, 1), out2.shape
    assert jnp.allclose(out2, ref2, rtol=1e-5, atol=1e-5), (out2, ref2)

    print("KERNEL_OK")
</pallas_src>

<mosaic_0001>
module attributes {stable_mosaic.version = 11 : i64} {
  func.func @_quadratic_cost_kernel(%arg0: i32, %arg1: memref<8x24xf32, #tpu.memory_space<vmem>>, %arg2: memref<24x24xf32, #tpu.memory_space<vmem>>, %arg3: memref<8x1xf32, #tpu.memory_space<vmem>>) attributes {dimension_semantics = [#tpu.dimension_semantics<parallel>], iteration_bounds = array<i64: 1>, scalar_prefetch = 0 : i64, scratch_operands = 0 : i64, tpu.core_type = #tpu.core_type<tc>, window_params = [{transform_indices = @transform_0, window_bounds = array<i64: 8, 24>}, {pipeline_mode = #tpu.pipeline_mode<synchronous>, transform_indices = @transform_1, window_bounds = array<i64: 24, 24>}, {transform_indices = @transform_2, window_bounds = array<i64: 8, 1>}]} {
    %c0 = arith.constant 0 : index
    %c0_0 = arith.constant 0 : index
    %0 = vector.load %arg1[%c0, %c0_0] : memref<8x24xf32, #tpu.memory_space<vmem>>, vector<8x24xf32>
    %c0_1 = arith.constant 0 : index
    %c0_2 = arith.constant 0 : index
    %1 = vector.load %arg2[%c0_1, %c0_2] : memref<24x24xf32, #tpu.memory_space<vmem>>, vector<24x24xf32>
    %cst = arith.constant dense<0.000000e+00> : vector<8x24xf32>
    %2 = tpu.matmul %0, %1, %cst {dimension_numbers = #tpu.dot_dimension_numbers<[1], [0], [0], [1], [0, 0, 1, 1], [], []>} : vector<8x24xf32>, vector<24x24xf32>, vector<8x24xf32> -> vector<8x24xf32>
    %3 = arith.mulf %2, %0 : vector<8x24xf32>
    %cst_3 = arith.constant dense<0.000000e+00> : vector<8xf32>
    %4 = vector.multi_reduction <add>, %3, %cst_3 [1] : vector<8x24xf32> to vector<8xf32>
    %5 = vector.shape_cast %4 : vector<8xf32> to vector<8x1xf32>
    %c0_4 = arith.constant 0 : index
    %c0_5 = arith.constant 0 : index
    %6 = vector.load %arg3[%c0_4, %c0_5] : memref<8x1xf32, #tpu.memory_space<vmem>>, vector<8x1xf32>
    tpu.vector_store %arg3[%c0_4, %c0_5], %5 {strides = array<i32>} : memref<8x1xf32, #tpu.memory_space<vmem>>, vector<8x1xf32>,
    return
  }
  func.func @transform_0(%arg0: i32) -> (i32, i32) {
    %c0_i32 = arith.constant 0 : i32
    %c0_i32_0 = arith.constant 0 : i32
    return %arg0, %c0_i32 : i32, i32
  }
  func.func @transform_1(%arg0: i32) -> (i32, i32) {
    %c0_i32 = arith.constant 0 : i32
    %c0_i32_0 = arith.constant 0 : i32
    %c0_i32_1 = arith.constant 0 : i32
    return %c0_i32, %c0_i32_0 : i32, i32
  }
  func.func @transform_2(%arg0: i32) -> (i32, i32) {
    %c0_i32 = arith.constant 0 : i32
    %c0_i32_0 = arith.constant 0 : i32
    return %arg0, %c0_i32 : i32, i32
  }
}

</mosaic_0001>

<bundles_post_ra>
// kernel: tpu_custom_call.1
= control target key start
LH: loop header
LB: loop body
LE: loop exit
PB: predicated region body
PF: predicated region fallthrough
CT: control target
= control target key end

     0   :  { %7 = vsyncpa [#allocation3], 0  ;;  %s166_s0 = inlined_call_operand.hbm [shape: f32[8,24], index: 0, kind: input, shape index: {}]   ;;  %s167_s1 = inlined_call_operand.hbm [shape: f32[24,24], index: 1, kind: input, shape index: {}]   ;;  %s168_s2 = inlined_call_operand.vmem [shape: f32[8,1], index: 2, kind: output, shape index: {}]  }
   0x1   :  { %s14_s11 = sshll.u32 %s166_s0, 4  ;;  %s15_s11 = int_to_ptr.hbm [resolvable:$true] %s14_s11 }
   0x2   :  { %8 = vsyncpa [#allocation5], 0  ;;  %s138_s12 = smov [#allocation2]   ;;  %s24_s16 = sshll.u32 %s167_s1, 4  ;;  %s25_s16 = int_to_ptr.hbm [resolvable:$true] %s24_s16 }
   0x3   :  { %s16_s13 = sshll.u32 %s138_s12, 4  ;;  %s139_s17 = smov [#allocation4]   ;;  %s17_s13 = int_to_ptr.vmem [resolvable:$true] %s16_s13 }
   0x4   :  { %19 = dma.hbm_to_vmem [thread:$0]  %s15_s11, 128, %s17_s13, [#allocation3]  }
   0x5   :  { %s26_s18 = sshll.u32 %s139_s17, 4  ;;  %s140_s19 = smov 128   ;;  %s27_s18 = int_to_ptr.vmem [resolvable:$true] %s26_s18 }
   0x6   :  { %s141_s20 = smov 8  }
   0x7   :  { %32 = dma.hbm_to_vmem [thread:$0]  %s25_s16, 384, %s27_s18, [#allocation5], %s140_s19, %s140_s19, %s141_s20  }
   0x8   :  { %134 = dma.done.wait [#allocation3], 128  }
   0x9   :  { %135 = vsyncadd [#allocation3], 4294967168 }
   0xa   :  { %136 = dma.done.wait [#allocation5], 384  }
   0xb   :  { %137 = vsyncadd [#allocation5], 4294966912  ;;  %v44_v0 = vld [vmem:[#allocation4 + $0x10] sm:$0xff]  ;;  %v43_v1 = vld [vmem:[#allocation4 + $0x8] sm:$0xff]  ;;  %vm45_vm0 = vcmask 195584   ;;  %vm73_vm1 = vcmask 7168  }
   0xc   :  { %62 = vmatpush.msra.mxu0 %v44_v0  ;;  %v42_v2 = vld [vmem:[#allocation4] sm:$0xff]  ;;  %v41_v3 = vld [vmem:[#allocation2] sm:$0xff] }
   0xe   :  { %63 = vmatpush.msra.mxu0 %v43_v1 }
  0x10   :  { %64 = vmatpush.msra.mxu0 %v42_v2 }
  0x11   :  { %81 = vmatmul.msk.f32.vlgmr.msra.gmra.mxu0 %vm45_vm0, %v41_v3 }
  0x8e   :  { %v66_v4 = vpop.f32.mrf.mxu0 }
  0x8f   :  { %v69_v5 = vmul.f32 %v66_v4, %v41_v3 }
  0x91   :  { %v70_v6 = vsel %vm45_vm0, %v69_v5, 0.0 }
  0x92   :  { %71 = vadd.xlane.f32.xlu0 %v70_v6 }
 0x105   :  { %v72_v7 = vpop.xlane.xlu0 %71 }
 0x106   :  { %74 = vst.msk [vmem:[%s168_s2] sm:$0xff] %vm73_vm1, %v72_v7 }
 0x107   :  { %79 = vsyncpa [#allocation3], 1 }
 0x108   :  { %80 = vsyncpa [#allocation5], 1 }

</bundles_post_ra>
